<compile_context>
chip_gen: v7x
topology: tpu7x:2x2x1
jax: 0.10.0
libtpu: 0.0.40
codegen_flags: <defaults>
</compile_context>

<pallas_src>
import functools
import math

import jax
import jax.numpy as jnp
from jax import lax
from jax.experimental import pallas as pl
from jax.experimental.pallas import tpu as pltpu

_EPS = 1e-6
# Per-tile f32 element budget (~1 MiB tiles reach ~85% of HBM roofline while
# 2x double-buffered in+out tiles stay far below the scoped VMEM limit).
_TILE_BUDGET_ELEMS = (1 * 1024 * 1024) // 4


def _round_up(a, b):
    return ((a + b - 1) // b) * b


def _int32_wrap(v):
    v &= 0xFFFFFFFF
    return v - (1 << 32) if v >= (1 << 31) else v


def _gumbel_softmax_kernel(x_ref, out_ref, *, inv_tau, add_noise, seed_off, reduce_axis):
    # x_ref / out_ref: a VMEM tile; softmax is taken along `reduce_axis` (0 or 1).
    x = x_ref[...].astype(jnp.float32)

    if add_noise:
        tm, tn = x.shape
        row = lax.broadcasted_iota(jnp.int32, (tm, tn), 0)
        col = lax.broadcasted_iota(jnp.int32, (tm, tn), 1)
        # Unique int32 counter per element across the whole grid (wrap is fine).
        cnt = (pl.program_id(0) * jnp.int32(tm * tn)
               + row * jnp.int32(tn) + col + jnp.int32(seed_off))
        # Integer hash (degski/lowbias style). "(h >> k) & mask" == logical shift.
        h = cnt
        h = (((h >> 16) & 0xFFFF) ^ h) * jnp.int32(0x045D9F3B)
        h = (((h >> 16) & 0xFFFF) ^ h) * jnp.int32(0x045D9F3B)
        h = ((h >> 16) & 0xFFFF) ^ h
        # Uniform in [0, 1) with 24 random bits.
        u = ((h >> 8) & 0xFFFFFF).astype(jnp.float32) * (1.0 / 16777216.0)
        # Exp(1) sample (clamped away from 0); PyTorch: gumbel = -log(Exp(1)).
        e_smp = jnp.maximum(-jnp.log(1.0 - u), 1e-20)
        # Fused: (log(x+eps) - log(E)) / tau  ==  log((x+eps)/E) * inv_tau
        y = jnp.log((x + _EPS) / e_smp) * inv_tau
    else:
        y = jnp.log(x + _EPS) * inv_tau

    # Numerically stable softmax along `reduce_axis`.
    y = y - jnp.max(y, axis=reduce_axis, keepdims=True)
    ez = jnp.exp(y)
    denom = jnp.sum(ez, axis=reduce_axis, keepdims=True)
    out_ref[...] = (ez * (1.0 / denom)).astype(out_ref.dtype)


def gumbel_softmax(probs, dim=-1, *, temperature=1.0, add_gumbel_noise=True, seed=0):
    """JAX wrapper reproducing GumbelSoftmax.forward(probs, dim)."""
    probs = jnp.asarray(probs)
    ndim = probs.ndim
    d = dim % ndim
    if d != ndim - 1:
        # TODO(synk): dim != -1 pays two extra XLA transpose (HBM) passes; a strided
        # BlockSpec layout could avoid it.  dim == -1 is the fast path.
        x = jnp.moveaxis(probs, d, -1)
    else:
        x = probs

    lead_shape = x.shape[:-1]
    N = x.shape[-1]
    M = int(math.prod(lead_shape)) if lead_shape else 1
    x2 = x.reshape(M, N)

    inv_tau = 1.0 / float(temperature)
    seed_off = _int32_wrap(int(seed) * 1000003 + 0x5BD1E995)

    lane_dense = N < 128
    if lane_dense:
        # Softmax axis (< 128) goes on sublanes; flattened rows go on lanes so that
        # loads/stores are lane-dense (unmasked, full-width) and vregs fully used.
        tl = (_TILE_BUDGET_ELEMS // max(N, 1)) // 128 * 128
        tl = max(128, min(tl, _round_up(M, 128)))
        mp = _round_up(M, tl)
        slab = jnp.pad(x2, ((0, mp - M), (0, 0))).T          # (N, mp)
        block = (N, tl)
        index_map = lambda i: (0, i)
        reduce_axis = 0
        grid = (mp // tl,)
    else:
        tm = (_TILE_BUDGET_ELEMS // N) // 8 * 8
        tm = max(8, min(tm, _round_up(M, 8)))
        mp = _round_up(M, tm)
        slab = jnp.pad(x2, ((0, mp - M), (0, 0)))            # (mp, N)
        block = (tm, N)
        index_map = lambda i: (i, 0)
        reduce_axis = 1
        grid = (mp // tm,)

    kernel = functools.partial(
        _gumbel_softmax_kernel,
        inv_tau=inv_tau,
        add_noise=bool(add_gumbel_noise),
        seed_off=seed_off,
        reduce_axis=reduce_axis,
    )

    out_slab = pl.pallas_call(
        kernel,
        out_shape=jax.ShapeDtypeStruct(slab.shape, x2.dtype),
        grid=grid,
        in_specs=[pl.BlockSpec(block, index_map)],
        out_specs=pl.BlockSpec(block, index_map),
        compiler_params=pltpu.CompilerParams(
            # Tiles are independent (noise is keyed on program_id, not on order),
            # so megacore sharding on v7x is safe; harmless on single-TC chips.
            dimension_semantics=("parallel",),
            vmem_limit_bytes=32 * 1024 * 1024,
        ),
    )(slab)

    out2 = (out_slab.T if lane_dense else out_slab)[:M]
    out = out2.reshape(x.shape)
    if d != ndim - 1:
        out = jnp.moveaxis(out, -1, d)
    return out


if __name__ == "__main__":
    key = jax.random.PRNGKey(0)
    # probs: positive values, normalized over the softmax dim.
    raw = jax.random.uniform(key, (2, 4, 16, 16), dtype=jnp.float32, minval=0.0, maxval=1.0)
    probs = raw / jnp.sum(raw, axis=-1, keepdims=True)

    # Branch 1: with Gumbel noise (default behaviour of the module).
    out_noisy = jax.block_until_ready(
        gumbel_softmax(probs, dim=-1, temperature=1.0, add_gumbel_noise=True, seed=42))

    # Branch 2: no noise -> plain softmax(log(probs+eps)/tau) (lane-dense path, N=16).
    out_plain = jax.block_until_ready(
        gumbel_softmax(probs, dim=-1, temperature=0.5, add_gumbel_noise=False))

    # Branch 3: exercise the N >= 128 row-tiled layout.
    raw2 = jax.random.uniform(jax.random.PRNGKey(1), (4, 256), dtype=jnp.float32)
    probs2 = raw2 / jnp.sum(raw2, axis=-1, keepdims=True)
    out_wide = jax.block_until_ready(
        gumbel_softmax(probs2, dim=-1, temperature=1.0, add_gumbel_noise=False))

    # Sanity checks: finite, correct shape, rows sum to 1.
    assert out_noisy.shape == probs.shape and out_plain.shape == probs.shape
    assert bool(jnp.all(jnp.isfinite(out_noisy))) and bool(jnp.all(jnp.isfinite(out_plain)))
    assert bool(jnp.allclose(jnp.sum(out_noisy, axis=-1), 1.0, atol=1e-4))
    assert bool(jnp.allclose(jnp.sum(out_plain, axis=-1), 1.0, atol=1e-4))

    # Reference checks for the deterministic (no-noise) branches.
    ref_plain = jax.nn.softmax(jnp.log(probs + _EPS) / 0.5, axis=-1)
    assert bool(jnp.allclose(out_plain, ref_plain, atol=1e-5))
    ref_wide = jax.nn.softmax(jnp.log(probs2 + _EPS), axis=-1)
    assert bool(jnp.allclose(out_wide, ref_wide, atol=1e-5))

    print("KERNEL_OK")
</pallas_src>

<mosaic_0001>
module attributes {stable_mosaic.version = 11 : i64} {
  func.func @_gumbel_softmax_kernel(%arg0: i32, %arg1: memref<16x128xf32, #tpu.memory_space<vmem>>, %arg2: memref<16x128xf32, #tpu.memory_space<vmem>>) attributes {dimension_semantics = [#tpu.dimension_semantics<parallel>], iteration_bounds = array<i64: 1>, scalar_prefetch = 0 : i64, scratch_operands = 0 : i64, tpu.core_type = #tpu.core_type<tc>, window_params = [{transform_indices = @transform_0, window_bounds = array<i64: 16, 128>}, {transform_indices = @transform_1, window_bounds = array<i64: 16, 128>}]} {
    %c0 = arith.constant 0 : index
    %c0_0 = arith.constant 0 : index
    %0 = vector.load %arg1[%c0, %c0_0] : memref<16x128xf32, #tpu.memory_space<vmem>>, vector<16x128xf32>
    %1 = tpu.iota {dimensions = array<i32: 0>} : vector<16x128xi32>
    %2 = tpu.iota {dimensions = array<i32: 1>} : vector<16x128xi32>
    %c2048_i32 = arith.constant 2048 : i32
    %3 = arith.muli %arg0, %c2048_i32 : i32
    %c128_i32 = arith.constant 128 : i32
    %4 = vector.broadcast %c128_i32 : i32 to vector<16x128xi32>
    %5 = arith.muli %1, %4 : vector<16x128xi32>
    %6 = vector.broadcast %3 : i32 to vector<16x128xi32>
    %7 = arith.addi %6, %5 : vector<16x128xi32>
    %8 = arith.addi %7, %2 : vector<16x128xi32>
    %c1582483603_i32 = arith.constant 1582483603 : i32
    %9 = vector.broadcast %c1582483603_i32 : i32 to vector<16x128xi32>
    %10 = arith.addi %8, %9 : vector<16x128xi32>
    %c16_i32 = arith.constant 16 : i32
    %11 = vector.broadcast %c16_i32 : i32 to vector<16x128xi32>
    %12 = arith.shrsi %10, %11 : vector<16x128xi32>
    %c65535_i32 = arith.constant 65535 : i32
    %13 = vector.broadcast %c65535_i32 : i32 to vector<16x128xi32>
    %14 = arith.andi %12, %13 : vector<16x128xi32>
    %15 = arith.xori %14, %10 : vector<16x128xi32>
    %c73244475_i32 = arith.constant 73244475 : i32
    %16 = vector.broadcast %c73244475_i32 : i32 to vector<16x128xi32>
    %17 = arith.muli %15, %16 : vector<16x128xi32>
    %c16_i32_1 = arith.constant 16 : i32
    %18 = vector.broadcast %c16_i32_1 : i32 to vector<16x128xi32>
    %19 = arith.shrsi %17, %18 : vector<16x128xi32>
    %c65535_i32_2 = arith.constant 65535 : i32
    %20 = vector.broadcast %c65535_i32_2 : i32 to vector<16x128xi32>
    %21 = arith.andi %19, %20 : vector<16x128xi32>
    %22 = arith.xori %21, %17 : vector<16x128xi32>
    %c73244475_i32_3 = arith.constant 73244475 : i32
    %23 = vector.broadcast %c73244475_i32_3 : i32 to vector<16x128xi32>
    %24 = arith.muli %22, %23 : vector<16x128xi32>
    %c16_i32_4 = arith.constant 16 : i32
    %25 = vector.broadcast %c16_i32_4 : i32 to vector<16x128xi32>
    %26 = arith.shrsi %24, %25 : vector<16x128xi32>
    %c65535_i32_5 = arith.constant 65535 : i32
    %27 = vector.broadcast %c65535_i32_5 : i32 to vector<16x128xi32>
    %28 = arith.andi %26, %27 : vector<16x128xi32>
    %29 = arith.xori %28, %24 : vector<16x128xi32>
    %c8_i32 = arith.constant 8 : i32
    %30 = vector.broadcast %c8_i32 : i32 to vector<16x128xi32>
    %31 = arith.shrsi %29, %30 : vector<16x128xi32>
    %c16777215_i32 = arith.constant 16777215 : i32
    %32 = vector.broadcast %c16777215_i32 : i32 to vector<16x128xi32>
    %33 = arith.andi %31, %32 : vector<16x128xi32>
    %34 = arith.sitofp %33 : vector<16x128xi32> to vector<16x128xf32>
    %cst = arith.constant 5.96046448E-8 : f32
    %35 = vector.broadcast %cst : f32 to vector<16x128xf32>
    %36 = arith.mulf %34, %35 : vector<16x128xf32>
    %cst_6 = arith.constant 1.000000e+00 : f32
    %37 = vector.broadcast %cst_6 : f32 to vector<16x128xf32>
    %38 = arith.subf %37, %36 : vector<16x128xf32>
    %39 = math.log %38 : vector<16x128xf32>
    %cst_7 = arith.constant 0.000000e+00 : f32
    %40 = vector.broadcast %cst_7 : f32 to vector<16x128xf32>
    %41 = arith.subf %40, %39 : vector<16x128xf32>
    %cst_8 = arith.constant 9.99999968E-21 : f32
    %42 = vector.broadcast %cst_8 : f32 to vector<16x128xf32>
    %43 = arith.maximumf %41, %42 : vector<16x128xf32>
    %cst_9 = arith.constant 9.99999997E-7 : f32
    %44 = vector.broadcast %cst_9 : f32 to vector<16x128xf32>
    %45 = arith.addf %0, %44 : vector<16x128xf32>
    %46 = arith.divf %45, %43 : vector<16x128xf32>
    %47 = math.log %46 : vector<16x128xf32>
    %cst_10 = arith.constant 1.000000e+00 : f32
    %48 = vector.broadcast %cst_10 : f32 to vector<16x128xf32>
    %49 = arith.mulf %47, %48 : vector<16x128xf32>
    %cst_11 = arith.constant dense<0xFF800000> : vector<128xf32>
    %50 = vector.multi_reduction <maximumf>, %49, %cst_11 [0] : vector<16x128xf32> to vector<128xf32>
    %51 = vector.shape_cast %50 : vector<128xf32> to vector<1x128xf32>
    %52 = vector.broadcast %51 : vector<1x128xf32> to vector<16x128xf32>
    %53 = arith.subf %49, %52 : vector<16x128xf32>
    %54 = math.exp %53 : vector<16x128xf32>
    %cst_12 = arith.constant dense<0.000000e+00> : vector<128xf32>
    %55 = vector.multi_reduction <add>, %54, %cst_12 [0] : vector<16x128xf32> to vector<128xf32>
    %56 = vector.shape_cast %55 : vector<128xf32> to vector<1x128xf32>
    %cst_13 = arith.constant 1.000000e+00 : f32
    %57 = vector.broadcast %cst_13 : f32 to vector<1x128xf32>
    %58 = arith.divf %57, %56 : vector<1x128xf32>
    %59 = vector.broadcast %58 : vector<1x128xf32> to vector<16x128xf32>
    %60 = arith.mulf %54, %59 : vector<16x128xf32>
    %c0_14 = arith.constant 0 : index
    %c0_15 = arith.constant 0 : index
    %61 = vector.load %arg2[%c0_14, %c0_15] : memref<16x128xf32, #tpu.memory_space<vmem>>, vector<16x128xf32>
    tpu.vector_store %arg2[%c0_14, %c0_15], %60 {strides = array<i32>} : memref<16x128xf32, #tpu.memory_space<vmem>>, vector<16x128xf32>,
    return
  }
  func.func @transform_0(%arg0: i32) -> (i32, i32) {
    %c0_i32 = arith.constant 0 : i32
    %c0_i32_0 = arith.constant 0 : i32
    return %c0_i32, %arg0 : i32, i32
  }
  func.func @transform_1(%arg0: i32) -> (i32, i32) {
    %c0_i32 = arith.constant 0 : i32
    %c0_i32_0 = arith.constant 0 : i32
    return %c0_i32, %arg0 : i32, i32
  }
}

</mosaic_0001>

<bundles_post_ra>
// kernel: tpu_custom_call.1
= control target key start
LH: loop header
LB: loop body
LE: loop exit
PB: predicated region body
PF: predicated region fallthrough
CT: control target
= control target key end

     0   :  { %6 = vsyncpa [#allocation3], 0  ;;  %s255_s0 = inlined_call_operand.hbm [shape: f32[16,128], index: 0, kind: input, shape index: {}]   ;;  %s256_s1 = inlined_call_operand.hbm [shape: f32[16,128], index: 1, kind: output, shape index: {}]  }
   0x1   :  { %7 = vsyncpa [#allocation4], 0  ;;  %s211_s6 = smov [#allocation2]   ;;  %s163_s10 = scalar_lea.hbm %s255_s0, 256 }
   0x2   :  { %s13_s7 = sshll.u32 %s211_s6, 4  ;;  %p164_p0 = scmp.ne.s32.totalorder %s255_s0, %s163_s10  ;;  %s14_s7 = int_to_ptr.vmem [resolvable:$true] %s13_s7 }
   0x3   :  { %p167_p1 = scmp.lt.u32.totalorder %s163_s10, %s255_s0 }
   0x5   :  { %p169_p2 = pnand %p167_p1, %p164_p0 }
   0x7   :  { %172 = shalt.err (!%p169_p2)
}
   0x8   :  { %s173_s15 = scalar_lea.vmem %s14_s7, 256  ;;  %p178_p4 = scmp.lt.s32.totalorder %s14_s7, %s14_s7 }
   0x9   :  { %p174_p3 = scmp.ne.s32.totalorder %s14_s7, %s173_s15  ;;  %p179_p5 = scmp.lt.s32.totalorder %s173_s15, %s173_s15 }
   0xb   :  { %p180_p6 = por %p179_p5, %p178_p4 }
   0xd   :  { %p181_p7 = pnand %p180_p6, %p174_p3 }
   0xf   :  { %184 = shalt.err (!%p181_p7)
}
  0x10   :  { %s212_s16 = smov 128   ;;  %s213_s17 = smov 8  }
  0x11   :  { %19 = dma.hbm_to_vmem [thread:$0]  %s255_s0, 256, %s14_s7, [#allocation3], %s212_s16, %s212_s16, %s213_s17  }
  0x12   :  { %207 = dma.done.wait [#allocation3], 256  }
  0x13   :  { %208 = vsyncadd [#allocation3], 4294967040  ;;  %v25_v0 = vlaneseq  ;;  %v23_v42 = vld [vmem:[#allocation2] sm:$0xff]  ;;  %v24_v43 = vld [vmem:[#allocation2 + $0x8] sm:$0xff]  ;;  %s214_s0 = smov [#allocation5]  }
  0x14   :  { %v80_v44 = vadd.f32 1e-06, %v23_v42  ;;  %v81_v45 = vadd.f32 1e-06, %v24_v43  ;;  %s121_s20 = sshll.u32 %s214_s0, 4  ;;  %s122_s20 = int_to_ptr.vmem [resolvable:$true] %s121_s20 }
  0x15   :  { %v26_v1 = vshrl.u32 %v25_v0, 7  ;;  %v29_v2 = vand.u32 127, %v25_v0  ;;  %s185_s21 = scalar_lea.vmem %s122_s20, 256  ;;  %p190_p9 = scmp.lt.s32.totalorder %s122_s20, %s122_s20 }
  0x16   :  { %p186_p8 = scmp.ne.s32.totalorder %s122_s20, %s185_s21  ;;  %p191_p10 = scmp.lt.s32.totalorder %s185_s21, %s185_s21 }
  0x17   :  { %v27_v3 = vadd.s32 8, %v26_v1  ;;  %v31_v4 = vmul.u32 128, %v26_v1 }
  0x18   :  { %p192_p11 = por %p191_p10, %p190_p9 }
  0x19   :  { %v32_v5 = vmul.u32 128, %v27_v3  ;;  %v36_v6 = vadd.s32 %v31_v4, %v29_v2 }
  0x1a   :  { %p193_p12 = pnand %p192_p11, %p186_p8 }
  0x1b   :  { %v37_v7 = vadd.s32 %v32_v5, %v29_v2  ;;  %v38_v8 = vadd.s32 1582483603, %v36_v6 }
  0x1d   :  { %v39_v9 = vadd.s32 1582483603, %v37_v7  ;;  %v133_v10 = vshrl.u32 %v38_v8, 16 }
  0x1f   :  { %v134_v11 = vshrl.u32 %v39_v9, 16  ;;  %v44_v12 = vxor.u32 %v133_v10, %v38_v8 }
  0x21   :  { %v45_v13 = vxor.u32 %v134_v11, %v39_v9  ;;  %v46_v14 = vmul.u32 73244475, %v44_v12 }
  0x23   :  { %v47_v15 = vmul.u32 73244475, %v45_v13  ;;  %v135_v16 = vshrl.u32 %v46_v14, 16 }
  0x25   :  { %v136_v17 = vshrl.u32 %v47_v15, 16  ;;  %v52_v18 = vxor.u32 %v135_v16, %v46_v14 }
  0x27   :  { %v53_v19 = vxor.u32 %v136_v17, %v47_v15  ;;  %v54_v20 = vmul.u32 73244475, %v52_v18 }
  0x29   :  { %v55_v21 = vmul.u32 73244475, %v53_v19  ;;  %v137_v22 = vshrl.u32 %v54_v20, 16 }
  0x2b   :  { %v138_v23 = vshrl.u32 %v55_v21, 16  ;;  %v60_v24 = vxor.u32 %v137_v22, %v54_v20 }
  0x2d   :  { %v61_v25 = vxor.u32 %v138_v23, %v55_v21  ;;  %v139_v26 = vshrl.u32 %v60_v24, 8 }
  0x2f   :  { %v140_v27 = vshrl.u32 %v61_v25, 8  ;;  %v66_v28 = vcvt.s32.f32 %v139_v26 }
  0x31   :  { %v67_v29 = vcvt.s32.f32 %v140_v27  ;;  %v68_v30 = vmul.f32 5.9604645e-08, %v66_v28 }
  0x33   :  { %v69_v31 = vmul.f32 5.9604645e-08, %v67_v29  ;;  %v70_v32 = vsub.f32 1.0, %v68_v30 }
  0x35   :  { %v71_v33 = vsub.f32 1.0, %v69_v31  ;;  %145 = vlog2.f32 %v70_v32 }
  0x37   :  { %147 = vlog2.f32 %v71_v33 }
  0x3f   :  { %v146_v34 = vpop.eup %145 }
  0x40   :  { %v73_v35 = vmul.f32 0.6931472, %v146_v34 }
  0x41   :  { %v148_v36 = vpop.eup %147 }
  0x42   :  { %v75_v37 = vmul.f32 0.6931472, %v148_v36  ;;  %v76_v38 = vsub.f32 0.0, %v73_v35 }
  0x44   :  { %v77_v39 = vsub.f32 0.0, %v75_v37  ;;  %v78_v40 = vmax.f32 %v76_v38, 1e-20 }
  0x46   :  { %v79_v41 = vmax.f32 %v77_v39, 1e-20  ;;  %149 = vrcp.f32 %v78_v40 }
  0x48   :  { %151 = vrcp.f32 %v79_v41 }
  0x50   :  { %v150_v46 = vpop.eup %149 }
  0x51   :  { %v83_v47 = vmul.f32 %v150_v46, %v80_v44 }
  0x52   :  { %v152_v48 = vpop.eup %151 }
  0x53   :  { %v85_v49 = vmul.f32 %v152_v48, %v81_v45  ;;  %153 = vlog2.f32 %v83_v47 }
  0x55   :  { %155 = vlog2.f32 %v85_v49 }
  0x5d   :  { %v154_v50 = vpop.eup %153 }
  0x5e   :  { %v87_v51 = vmul.f32 0.6931472, %v154_v50 }
  0x5f   :  { %v156_v52 = vpop.eup %155 }
  0x60   :  { %v89_v53 = vmul.f32 0.6931472, %v156_v52 }
  0x62   :  { %v90_v54 = vmax.f32 %v87_v51, %v89_v53 }
  0x64   :  { %v91_v55 = vrot.slane %v90_v54, 4 }
  0x66   :  { %v92_v56 = vmax.f32 %v90_v54, %v91_v55 }
  0x68   :  { %v93_v57 = vrot.slane %v92_v56, 2 }
  0x6a   :  { %v94_v58 = vmax.f32 %v92_v56, %v93_v57 }
  0x6c   :  { %v95_v59 = vrot.slane %v94_v58, 1 }
  0x6e   :  { %v96_v60 = vmax.f32 %v94_v58, %v95_v59 }
  0x70   :  { %v97_v61 = vsub.f32 %v87_v51, %v96_v60  ;;  %v98_v62 = vsub.f32 %v89_v53, %v96_v60 }
  0x72   :  { %v99_v63 = vmul.f32 1.442695, %v97_v61  ;;  %v101_v0 = vmul.f32 1.442695, %v98_v62 }
  0x74   :  { %157 = vpow2.f32 %v99_v63 }
  0x75   :  { %159 = vpow2.f32 %v101_v0 }
  0x7e   :  { %v158_v1 = vpop.eup %157 }
  0x7f   :  { %v160_v2 = vpop.eup %159 }
  0x80   :  { %v103_v3 = vadd.f32 %v160_v2, %v158_v1 }
  0x82   :  { %v104_v4 = vrot.slane %v103_v3, 4 }
  0x84   :  { %v105_v5 = vadd.f32 %v104_v4, %v103_v3 }
  0x86   :  { %v106_v6 = vrot.slane %v105_v5, 2 }
  0x88   :  { %v107_v7 = vadd.f32 %v106_v6, %v105_v5 }
  0x8a   :  { %v108_v8 = vrot.slane %v107_v7, 1 }
  0x8c   :  { %v109_v9 = vadd.f32 %v108_v8, %v107_v7 }
  0x8e   :  { %161 = vrcp.f32 %v109_v9 }
  0x98   :  { %v162_v10 = vpop.eup %161 }
  0x99   :  { %v112_v11 = vmul.f32 %v162_v10, %v158_v1  ;;  %v113_v12 = vmul.f32 %v162_v10, %v160_v2 }
  0x9b   :  { %114 = vst [vmem:[#allocation5] sm:$0xff] %v112_v11  ;;  %115 = vst [vmem:[#allocation5 + $0x8] sm:$0xff] %v113_v12 }
  0x9c   :  { %196 = shalt.err (!%p193_p12)
}
  0x9d   :  { %s197_s24 = scalar_lea.hbm %s256_s1, 256 }
  0x9e   :  { %p198_p13 = scmp.ne.s32.totalorder %s256_s1, %s197_s24  ;;  %p201_p0 = scmp.lt.u32.totalorder %s197_s24, %s256_s1 }
  0xa0   :  { %p203_p1 = pnand %p201_p0, %p198_p13 }
  0xa2   :  { %206 = shalt.err (!%p203_p1)
}
  0xa3   :  { %127 = dma.vmem_to_hbm [thread:$0]  %s122_s20, 256, %s256_s1, [#allocation4], %s212_s16, %s212_s16, %s213_s17  }
  0xa4   :  { %209 = dma.done.wait [#allocation4], 256  }
  0xa5   :  { %210 = vsyncadd [#allocation4], 4294967040 }
  0xa6   :  { %131 = vsyncpa [#allocation3], 1 }
  0xa7   :  { %132 = vsyncpa [#allocation4], 1 }

</bundles_post_ra>
